<compile_context>
chip_gen: v6e
topology: v6e:2x2x1
jax: 0.10.0
libtpu: 0.0.40
codegen_flags: <defaults>
</compile_context>

<pallas_src>
import functools

import numpy as np
import jax
import jax.numpy as jnp
from jax.experimental import pallas as pl
from jax.experimental.pallas import tpu as pltpu


def _layer_norm_kernel(eps, use_bias, x_ref, gb_ref, o_ref):
    """One (rows, F) tile; each row layer-normalized over the feature axis."""
    # Upcast to f32 for the reductions regardless of the I/O dtype.
    x = x_ref[...].astype(jnp.float32)               # (rows, F)
    gb = gb_ref[...].astype(jnp.float32)             # (2, F): row 0 = gamma, 1 = beta
    n = x.shape[1]

    mean = jnp.mean(x, axis=1, keepdims=True)
    centered = x - mean
    # Unbiased (Bessel, N-1) variance -> matches torch.Tensor.std default.
    var = jnp.sum(centered * centered, axis=1, keepdims=True) * (1.0 / (n - 1))
    denom = jnp.sqrt(var) + eps                       # eps added to the std itself

    # EUP approximate reciprocal on the narrow (rows, 1) column + one Newton
    # refinement step (both negligible cost) instead of a rows*F broadcast divide.
    inv = pl.reciprocal(denom, approx=True)
    inv = inv * (2.0 - denom * inv)

    out = gb[0:1, :] * (centered * inv)
    if use_bias:
        out = out + gb[1:2, :]
    o_ref[...] = out.astype(o_ref.dtype)


def layer_norm_forward(x, gamma, beta=None, *, eps=1e-6, use_bias=True,
                       block_rows=None, target_block_bytes=1 << 20):
    """Pallas-backed LayerNorm.forward for x of shape (batch, feature_size).

    block_rows=None auto-picks a tile of ~target_block_bytes of activations
    (rounded to the dtype's sublane multiple).  On v7x, pass a larger
    target_block_bytes (2-4 MiB) to better hide per-step overhead at 3.2 TB/s.
    """
    B, F = x.shape
    itemsize = jnp.dtype(x.dtype).itemsize
    # Sublane packing multiple: 8 rows for 32-bit, 16 for 16-bit, 32 for 8-bit.
    row_mult = 8 * max(1, 4 // itemsize)

    if block_rows is None:
        block_rows = max(row_mult, target_block_bytes // (F * itemsize))
    if block_rows >= B:
        block_rows = B                      # full-extent block: no divisibility rule
    else:
        block_rows = max(row_mult, (block_rows // row_mult) * row_mult)
    grid = (pl.cdiv(B, block_rows),)

    if beta is None:
        beta = jnp.zeros((F,), jnp.float32)
    # Pack gamma/beta into one f32 slab -> one DMA, grid-invariant -> VMEM-resident.
    gb = jnp.stack([gamma.astype(jnp.float32), beta.astype(jnp.float32)], axis=0)

    kernel = functools.partial(_layer_norm_kernel, eps, use_bias)
    cost = pl.CostEstimate(
        flops=8 * B * F,
        transcendentals=2 * B,
        bytes_accessed=2 * B * F * itemsize + 2 * F * 4,
    )
    return pl.pallas_call(
        kernel,
        out_shape=jax.ShapeDtypeStruct((B, F), x.dtype),
        grid_spec=pltpu.PrefetchScalarGridSpec(
            num_scalar_prefetch=0,
            grid=grid,
            in_specs=[
                pl.BlockSpec((block_rows, F), lambda i: (i, 0)),   # activations
                pl.BlockSpec((2, F), lambda i: (0, 0)),            # gamma/beta (resident)
            ],
            out_specs=pl.BlockSpec((block_rows, F), lambda i: (i, 0)),
        ),
        compiler_params=pltpu.CompilerParams(
            dimension_semantics=("parallel",),
        ),
        cost_estimate=cost,
    )(x, gb)


def reference_layer_norm(x, gamma, beta, *, eps=1e-6, use_bias=True):
    """Pure-JAX mirror of the PyTorch LayerNorm.forward (for verification)."""
    x = x.astype(jnp.float32)
    mean = x.mean(axis=1, keepdims=True)
    std = jnp.sqrt(x.var(axis=1, ddof=1, keepdims=True)) + eps
    out = gamma * ((x - mean) / std)
    if use_bias:
        out = out + beta
    return out


if __name__ == "__main__":
    B, F = 256, 128          # feature_size = 128 (lane-dense)

    key = jax.random.PRNGKey(0)
    kx, kg, kb = jax.random.split(key, 3)
    x = jax.random.normal(kx, (B, F), jnp.float32)
    # gamma_start=1.0 / beta=0 init, perturbed so the affine part is exercised.
    gamma = jnp.ones((F,), jnp.float32) + 0.1 * jax.random.normal(kg, (F,), jnp.float32)
    beta = 0.1 * jax.random.normal(kb, (F,), jnp.float32)

    ref = reference_layer_norm(x, gamma, beta, eps=1e-6, use_bias=True)

    # 1) f32, auto tile (single big block here since B is small).
    out = jax.block_until_ready(layer_norm_forward(x, gamma, beta, eps=1e-6))
    if not np.allclose(np.asarray(out), np.asarray(ref), atol=1e-4, rtol=1e-4):
        raise SystemExit("KERNEL MISMATCH vs reference (f32)")

    # 2) f32, forced multi-step grid (exercises the parallel axis / tiling path).
    out_t = jax.block_until_ready(
        layer_norm_forward(x, gamma, beta, eps=1e-6, block_rows=64))
    if not np.allclose(np.asarray(out_t), np.asarray(ref), atol=1e-4, rtol=1e-4):
        raise SystemExit("KERNEL MISMATCH vs reference (tiled f32)")

    # 3) bf16 I/O, f32 internal math (output quantized to bf16 -> loose tolerance).
    xb = x.astype(jnp.bfloat16)
    out_b = jax.block_until_ready(layer_norm_forward(xb, gamma, beta, eps=1e-6))
    ref_b = reference_layer_norm(xb, gamma, beta, eps=1e-6)
    if not np.allclose(np.asarray(out_b).astype(np.float32), np.asarray(ref_b),
                       atol=3e-2, rtol=3e-2):
        raise SystemExit("KERNEL MISMATCH vs reference (bf16)")

    print("KERNEL_OK")
</pallas_src>

<mosaic_0001>
module attributes {stable_mosaic.version = 11 : i64} {
  func.func @_layer_norm_kernel(%arg0: i32, %arg1: memref<256x128xf32, #tpu.memory_space<vmem>>, %arg2: memref<2x128xf32, #tpu.memory_space<vmem>>, %arg3: memref<256x128xf32, #tpu.memory_space<vmem>>) attributes {dimension_semantics = [#tpu.dimension_semantics<parallel>], iteration_bounds = array<i64: 1>, scalar_prefetch = 0 : i64, scratch_operands = 0 : i64, tpu.core_type = #tpu.core_type<tc>, window_params = [{transform_indices = @transform_0, window_bounds = array<i64: 256, 128>}, {pipeline_mode = #tpu.pipeline_mode<synchronous>, transform_indices = @transform_1, window_bounds = array<i64: 2, 128>}, {transform_indices = @transform_2, window_bounds = array<i64: 256, 128>}]} {
    %c0 = arith.constant 0 : index
    %c0_0 = arith.constant 0 : index
    %0 = vector.load %arg1[%c0, %c0_0] : memref<256x128xf32, #tpu.memory_space<vmem>>, vector<256x128xf32>
    %c0_1 = arith.constant 0 : index
    %c0_2 = arith.constant 0 : index
    %1 = vector.load %arg2[%c0_1, %c0_2] : memref<2x128xf32, #tpu.memory_space<vmem>>, vector<2x128xf32>
    %cst = arith.constant dense<0.000000e+00> : vector<256xf32>
    %2 = vector.multi_reduction <add>, %0, %cst [1] : vector<256x128xf32> to vector<256xf32>
    %3 = vector.shape_cast %2 : vector<256xf32> to vector<256x1xf32>
    %cst_3 = arith.constant 1.280000e+02 : f32
    %4 = vector.broadcast %cst_3 : f32 to vector<256x1xf32>
    %5 = arith.divf %3, %4 : vector<256x1xf32>
    %6 = vector.broadcast %5 : vector<256x1xf32> to vector<256x128xf32>
    %7 = arith.subf %0, %6 : vector<256x128xf32>
    %8 = arith.mulf %7, %7 : vector<256x128xf32>
    %cst_4 = arith.constant dense<0.000000e+00> : vector<256xf32>
    %9 = vector.multi_reduction <add>, %8, %cst_4 [1] : vector<256x128xf32> to vector<256xf32>
    %10 = vector.shape_cast %9 : vector<256xf32> to vector<256x1xf32>
    %cst_5 = arith.constant 0.00787401571 : f32
    %11 = vector.broadcast %cst_5 : f32 to vector<256x1xf32>
    %12 = arith.mulf %10, %11 : vector<256x1xf32>
    %13 = math.sqrt %12 : vector<256x1xf32>
    %cst_6 = arith.constant 9.99999997E-7 : f32
    %14 = vector.broadcast %cst_6 : f32 to vector<256x1xf32>
    %15 = arith.addf %13, %14 : vector<256x1xf32>
    %16 = tpu.reciprocal %15 {approx = true} : vector<256x1xf32> -> vector<256x1xf32>
    %17 = arith.mulf %15, %16 : vector<256x1xf32>
    %cst_7 = arith.constant 2.000000e+00 : f32
    %18 = vector.broadcast %cst_7 : f32 to vector<256x1xf32>
    %19 = arith.subf %18, %17 : vector<256x1xf32>
    %20 = arith.mulf %16, %19 : vector<256x1xf32>
    %21 = vector.extract_strided_slice %1 {offsets = [0, 0], sizes = [1, 128], strides = [1, 1]} : vector<2x128xf32> to vector<1x128xf32>
    %22 = vector.broadcast %20 : vector<256x1xf32> to vector<256x128xf32>
    %23 = arith.mulf %7, %22 : vector<256x128xf32>
    %24 = vector.broadcast %21 : vector<1x128xf32> to vector<256x128xf32>
    %25 = arith.mulf %24, %23 : vector<256x128xf32>
    %26 = vector.extract_strided_slice %1 {offsets = [1, 0], sizes = [1, 128], strides = [1, 1]} : vector<2x128xf32> to vector<1x128xf32>
    %27 = vector.broadcast %26 : vector<1x128xf32> to vector<256x128xf32>
    %28 = arith.addf %25, %27 : vector<256x128xf32>
    %c0_8 = arith.constant 0 : index
    %c0_9 = arith.constant 0 : index
    %29 = vector.load %arg3[%c0_8, %c0_9] : memref<256x128xf32, #tpu.memory_space<vmem>>, vector<256x128xf32>
    tpu.vector_store %arg3[%c0_8, %c0_9], %28 {strides = array<i32>} : memref<256x128xf32, #tpu.memory_space<vmem>>, vector<256x128xf32>,
    return
  }
  func.func @transform_0(%arg0: i32) -> (i32, i32) {
    %c0_i32 = arith.constant 0 : i32
    %c0_i32_0 = arith.constant 0 : i32
    return %arg0, %c0_i32 : i32, i32
  }
  func.func @transform_1(%arg0: i32) -> (i32, i32) {
    %c0_i32 = arith.constant 0 : i32
    %c0_i32_0 = arith.constant 0 : i32
    %c0_i32_1 = arith.constant 0 : i32
    return %c0_i32, %c0_i32_0 : i32, i32
  }
  func.func @transform_2(%arg0: i32) -> (i32, i32) {
    %c0_i32 = arith.constant 0 : i32
    %c0_i32_0 = arith.constant 0 : i32
    return %arg0, %c0_i32 : i32, i32
  }
}

</mosaic_0001>

<bundles_post_ra>
// kernel: tpu_custom_call.1
= control target key start
LH: loop header
LB: loop body
LE: loop exit
PB: predicated region body
PF: predicated region fallthrough
CT: control target
= control target key end

     0   :  { %7 = vsyncpa [#allocation3], 0  ;;  %s1935_s0 = inlined_call_operand.hbm [shape: f32[256,128], index: 0, kind: input, shape index: {}]   ;;  %s1936_s1 = inlined_call_operand.hbm [shape: f32[2,128], index: 1, kind: input, shape index: {}]   ;;  %s1937_s2 = inlined_call_operand.hbm [shape: f32[256,128], index: 2, kind: output, shape index: {}]  }
   0x1   :  { %8 = vsyncpa [#allocation6], 0 }
   0x2   :  { %9 = vsyncpa [#allocation4], 0  ;;  %s1065_s9 = smov [#allocation2]  }
   0x3   :  { %s15_s10 = sshll.u32 %s1065_s9, 4  ;;  %s16_s10 = int_to_ptr.vmem [resolvable:$true] %s15_s10 }
   0x4   :  { %s1007_s11 = scalar_lea.vmem %s16_s10, 4096  ;;  %p1012_p1 = scmp.lt.s32.totalorder %s16_s10, %s16_s10 }
   0x5   :  { %p1008_p0 = scmp.ne.s32.totalorder %s16_s10, %s1007_s11  ;;  %p1013_p2 = scmp.lt.s32.totalorder %s1007_s11, %s1007_s11 }
   0x7   :  { %p1014_p3 = por %p1013_p2, %p1012_p1 }
   0x9   :  { %p1015_p4 = pnand %p1014_p3, %p1008_p0 }
   0xb   :  { %1018 = shalt.err (!%p1015_p4)
}
   0xc   :  { %s1066_s12 = smov 128   ;;  %s1067_s13 = smov 8  }
   0xd   :  { %21 = dma.hbm_to_vmem [thread:$0]  %s1935_s0, 4096, %s16_s10, [#allocation3], %s1066_s12, %s1066_s12, %s1067_s13  }
   0xe   :  { %s1068_s16 = smov [#allocation5]  }
   0xf   :  { %s28_s17 = sshll.u32 %s1068_s16, 4  ;;  %s29_s17 = int_to_ptr.vmem [resolvable:$true] %s28_s17 }
  0x10   :  { %s1027_s18 = scalar_lea.vmem %s29_s17, 32  ;;  %p1032_p6 = scmp.lt.s32.totalorder %s29_s17, %s29_s17 }
  0x11   :  { %p1028_p5 = scmp.ne.s32.totalorder %s29_s17, %s1027_s18  ;;  %p1033_p7 = scmp.lt.s32.totalorder %s1027_s18, %s1027_s18 }
  0x13   :  { %p1034_p8 = por %p1033_p7, %p1032_p6 }
  0x15   :  { %p1035_p9 = pnand %p1034_p8, %p1028_p5 }
  0x17   :  { %1038 = shalt.err (!%p1035_p9)
}
  0x18   :  { %31 = dma.hbm_to_vmem [thread:$0]  %s1936_s1, 32, %s29_s17, [#allocation6]  }
  0x19   :  { %1059 = dma.done.wait [#allocation3], 4096  }
  0x1a   :  { %1060 = vsyncadd [#allocation3], 4294963200 }
  0x1b   :  { %1061 = dma.done.wait [#allocation6], 32  }
  0x1c   :  { %1062 = vsyncadd [#allocation6], 4294967264  ;;  %v1094_v0 = vld [vmem:[#allocation2] sm:$0xff]  ;;  %v1096_v1 = vld [vmem:[#allocation2 + $0x10] sm:$0xff]  ;;  %s1069_s0 = smov [#allocation7]  }
  0x1d   :  { %71 = vadd.xlane.f32.xlu0 %v1094_v0  ;;  %75 = vadd.xlane.f32.xlu1 %v1096_v1  ;;  %v1100_v2 = vld [vmem:[#allocation2 + $0x8] sm:$0xff]  ;;  %v1102_v3 = vld [vmem:[#allocation2 + $0x18] sm:$0xff]  ;;  %v1106_v4 = vld [vmem:[#allocation2 + $0x20] sm:$0xff]  ;;  %s853_s1 = sshll.u32 %s1069_s0, 4  ;;  %s854_s1 = int_to_ptr.vmem [resolvable:$true] %s853_s1 }
  0x1e   :  { %v1108_v5 = vld [vmem:[#allocation2 + $0x28] sm:$0xff]  ;;  %v1112_v6 = vld [vmem:[#allocation2 + $0x30] sm:$0xff]  ;;  %v1114_v7 = vld [vmem:[#allocation2 + $0x38] sm:$0xff]  ;;  %s1039_s21 = scalar_lea.vmem %s854_s1, 4096  ;;  %p1044_p11 = scmp.lt.s32.totalorder %s854_s1, %s854_s1 }
  0x1f   :  { %v1118_v8 = vld [vmem:[#allocation2 + $0x40] sm:$0xff]  ;;  %v1120_v9 = vld [vmem:[#allocation2 + $0x48] sm:$0xff]  ;;  %v1124_v10 = vld [vmem:[#allocation2 + $0x50] sm:$0xff]  ;;  %p1040_p10 = scmp.ne.s32.totalorder %s854_s1, %s1039_s21  ;;  %p1045_p12 = scmp.lt.s32.totalorder %s1039_s21, %s1039_s21 }
  0x20   :  { %v1126_v11 = vld [vmem:[#allocation2 + $0x58] sm:$0xff]  ;;  %v1130_v12 = vld [vmem:[#allocation2 + $0x60] sm:$0xff]  ;;  %v1132_v13 = vld [vmem:[#allocation2 + $0x68] sm:$0xff] }
  0x21   :  { %73 = vadd.xlane.f32.xlu0 %v1100_v2  ;;  %77 = vadd.xlane.f32.xlu1 %v1102_v3  ;;  %v1136_v14 = vld [vmem:[#allocation2 + $0x70] sm:$0xff]  ;;  %v1138_v15 = vld [vmem:[#allocation2 + $0x78] sm:$0xff]  ;;  %v1142_v16 = vld [vmem:[#allocation2 + $0x80] sm:$0xff]  ;;  %p1046_p13 = por %p1045_p12, %p1044_p11 }
  0x22   :  { %v1144_v17 = vld [vmem:[#allocation2 + $0x88] sm:$0xff]  ;;  %v1148_v18 = vld [vmem:[#allocation2 + $0x90] sm:$0xff]  ;;  %v1150_v19 = vld [vmem:[#allocation2 + $0x98] sm:$0xff] }
  0x23   :  { %v1154_v20 = vld [vmem:[#allocation2 + $0xa0] sm:$0xff]  ;;  %v1156_v21 = vld [vmem:[#allocation2 + $0xa8] sm:$0xff]  ;;  %v1160_v22 = vld [vmem:[#allocation2 + $0xb0] sm:$0xff]  ;;  %p1047_p0 = pnand %p1046_p13, %p1040_p10 }
  0x24   :  { %v1162_v23 = vld [vmem:[#allocation2 + $0xb8] sm:$0xff]  ;;  %v1166_v24 = vld [vmem:[#allocation2 + $0xc0] sm:$0xff]  ;;  %v1168_v25 = vld [vmem:[#allocation2 + $0xc8] sm:$0xff] }
  0x25   :  { %79 = vadd.xlane.f32.xlu0 %v1106_v4  ;;  %81 = vadd.xlane.f32.xlu1 %v1108_v5  ;;  %v1172_v26 = vld [vmem:[#allocation2 + $0xd0] sm:$0xff]  ;;  %v1174_v27 = vld [vmem:[#allocation2 + $0xd8] sm:$0xff]  ;;  %v1178_v28 = vld [vmem:[#allocation2 + $0xe0] sm:$0xff] }
  0x26   :  { %v1180_v29 = vld [vmem:[#allocation2 + $0xe8] sm:$0xff]  ;;  %v1184_v30 = vld [vmem:[#allocation2 + $0xf0] sm:$0xff]  ;;  %v1186_v31 = vld [vmem:[#allocation2 + $0xf8] sm:$0xff] }
  0x29   :  { %83 = vadd.xlane.f32.xlu0 %v1112_v6  ;;  %85 = vadd.xlane.f32.xlu1 %v1114_v7 }
  0x2d   :  { %87 = vadd.xlane.f32.xlu0 %v1118_v8  ;;  %89 = vadd.xlane.f32.xlu1 %v1120_v9 }
  0x31   :  { %91 = vadd.xlane.f32.xlu0 %v1124_v10  ;;  %93 = vadd.xlane.f32.xlu1 %v1126_v11 }
  0x35   :  { %95 = vadd.xlane.f32.xlu0 %v1130_v12  ;;  %97 = vadd.xlane.f32.xlu1 %v1132_v13 }
  0x39   :  { %99 = vadd.xlane.f32.xlu0 %v1136_v14  ;;  %101 = vadd.xlane.f32.xlu1 %v1138_v15 }
  0x3d   :  { %103 = vadd.xlane.f32.xlu0 %v1142_v16  ;;  %105 = vadd.xlane.f32.xlu1 %v1144_v17 }
  0x41   :  { %107 = vadd.xlane.f32.xlu0 %v1148_v18  ;;  %109 = vadd.xlane.f32.xlu1 %v1150_v19 }
  0x45   :  { %111 = vadd.xlane.f32.xlu0 %v1154_v20  ;;  %113 = vadd.xlane.f32.xlu1 %v1156_v21 }
  0x49   :  { %115 = vadd.xlane.f32.xlu0 %v1160_v22  ;;  %117 = vadd.xlane.f32.xlu1 %v1162_v23 }
  0x4d   :  { %119 = vadd.xlane.f32.xlu0 %v1166_v24  ;;  %121 = vadd.xlane.f32.xlu1 %v1168_v25 }
  0x51   :  { %123 = vadd.xlane.f32.xlu0 %v1172_v26  ;;  %125 = vadd.xlane.f32.xlu1 %v1174_v27 }
  0x55   :  { %127 = vadd.xlane.f32.xlu0 %v1178_v28  ;;  %129 = vadd.xlane.f32.xlu1 %v1180_v29 }
  0x59   :  { %131 = vadd.xlane.f32.xlu0 %v1184_v30  ;;  %133 = vadd.xlane.f32.xlu1 %v1186_v31 }
  0xa6   :  { %v72_v32 = vpop.xlane.xlu0 %71  ;;  %v76_v33 = vpop.xlane.xlu1 %75 }
  0xa7   :  { %v136_v34 = vmul.f32 0.0078125, %v72_v32  ;;  %v138_v35 = vmul.f32 0.0078125, %v76_v33 }
  0xa9   :  { %v1191_v36 = vsub.f32 %v1094_v0, %v136_v34  ;;  %v1194_v37 = vsub.f32 %v1096_v1, %v138_v35 }
  0xaa   :  { %v74_v38 = vpop.xlane.xlu0 %73  ;;  %v78_v39 = vpop.xlane.xlu1 %77 }
  0xab   :  { %v137_v40 = vmul.f32 0.0078125, %v74_v38  ;;  %v200_v41 = vmul.f32 %v1191_v36, %v1191_v36  ;;  %v139_v42 = vmul.f32 0.0078125, %v78_v39  ;;  %v202_v45 = vmul.f32 %v1194_v37, %v1194_v37 }
  0xad   :  { %v1199_v43 = vsub.f32 %v1100_v2, %v137_v40  ;;  %232 = vadd.xlane.f32.xlu0 %v200_v41  ;;  %v1202_v44 = vsub.f32 %v1102_v3, %v139_v42 }
  0xae   :  { %v80_v46 = vpop.xlane.xlu0 %79  ;;  %v82_v47 = vpop.xlane.xlu1 %81 }
  0xaf   :  { %v140_v48 = vmul.f32 0.0078125, %v80_v46  ;;  %v201_v49 = vmul.f32 %v1199_v43, %v1199_v43  ;;  %v141_v50 = vmul.f32 0.0078125, %v82_v47  ;;  %v203_v53 = vmul.f32 %v1202_v44, %v1202_v44 }
  0xb1   :  { %v1209_v51 = vsub.f32 %v1106_v4, %v140_v48  ;;  %236 = vadd.xlane.f32.xlu0 %v202_v45  ;;  %234 = vadd.xlane.f32.xlu1 %v201_v49  ;;  %v1212_v52 = vsub.f32 %v1108_v5, %v141_v50 }
  0xb2   :  { %v84_v54 = vpop.xlane.xlu0 %83  ;;  %v86_v55 = vpop.xlane.xlu1 %85 }
  0xb3   :  { %v142_v56 = vmul.f32 0.0078125, %v84_v54  ;;  %v204_v57 = vmul.f32 %v1209_v51, %v1209_v51  ;;  %v143_v58 = vmul.f32 0.0078125, %v86_v55  ;;  %v205_v61 = vmul.f32 %v1212_v52, %v1212_v52 }
  0xb5   :  { %v1219_v59 = vsub.f32 %v1112_v6, %v142_v56  ;;  %238 = vadd.xlane.f32.xlu1 %v203_v53  ;;  %240 = vadd.xlane.f32.xlu0 %v204_v57  ;;  %v1222_v60 = vsub.f32 %v1114_v7, %v143_v58 }
  0xb6   :  { %v88_v62 = vpop.xlane.xlu0 %87  ;;  %v90_v63 = vpop.xlane.xlu1 %89 }
  0xb7   :  { %v144_v0 = vmul.f32 0.0078125, %v88_v62  ;;  %v206_v1 = vmul.f32 %v1219_v59, %v1219_v59  ;;  %v145_v2 = vmul.f32 0.0078125, %v90_v63  ;;  %v207_v5 = vmul.f32 %v1222_v60, %v1222_v60 }
  0xb9   :  { %v1229_v3 = vsub.f32 %v1118_v8, %v144_v0  ;;  %242 = vadd.xlane.f32.xlu1 %v205_v61  ;;  %244 = vadd.xlane.f32.xlu0 %v206_v1  ;;  %v1232_v4 = vsub.f32 %v1120_v9, %v145_v2 }
  0xba   :  { %v92_v6 = vpop.xlane.xlu0 %91  ;;  %v94_v7 = vpop.xlane.xlu1 %93 }
  0xbb   :  { %v146_v32 = vmul.f32 0.0078125, %v92_v6  ;;  %v208_v33 = vmul.f32 %v1229_v3, %v1229_v3  ;;  %v147_v34 = vmul.f32 0.0078125, %v94_v7  ;;  %v209_v9 = vmul.f32 %v1232_v4, %v1232_v4 }
  0xbd   :  { %v1239_v35 = vsub.f32 %v1124_v10, %v146_v32  ;;  %246 = vadd.xlane.f32.xlu1 %v207_v5  ;;  %248 = vadd.xlane.f32.xlu0 %v208_v33  ;;  %v1242_v8 = vsub.f32 %v1126_v11, %v147_v34 }
  0xbe   :  { %v96_v38 = vpop.xlane.xlu0 %95  ;;  %v98_v39 = vpop.xlane.xlu1 %97 }
  0xbf   :  { %v148_v40 = vmul.f32 0.0078125, %v96_v38  ;;  %v210_v41 = vmul.f32 %v1239_v35, %v1239_v35  ;;  %v149_v42 = vmul.f32 0.0078125, %v98_v39  ;;  %v211_v11 = vmul.f32 %v1242_v8, %v1242_v8 }
  0xc1   :  { %v1249_v45 = vsub.f32 %v1130_v12, %v148_v40  ;;  %250 = vadd.xlane.f32.xlu1 %v209_v9  ;;  %252 = vadd.xlane.f32.xlu0 %v210_v41  ;;  %v1252_v10 = vsub.f32 %v1132_v13, %v149_v42 }
  0xc2   :  { %v100_v46 = vpop.xlane.xlu0 %99  ;;  %v102_v47 = vpop.xlane.xlu1 %101 }
  0xc3   :  { %v150_v48 = vmul.f32 0.0078125, %v100_v46  ;;  %v212_v49 = vmul.f32 %v1249_v45, %v1249_v45  ;;  %v151_v50 = vmul.f32 0.0078125, %v102_v47  ;;  %v213_v13 = vmul.f32 %v1252_v10, %v1252_v10 }
  0xc5   :  { %v1259_v53 = vsub.f32 %v1136_v14, %v150_v48  ;;  %254 = vadd.xlane.f32.xlu1 %v211_v11  ;;  %256 = vadd.xlane.f32.xlu0 %v212_v49  ;;  %v1262_v12 = vsub.f32 %v1138_v15, %v151_v50 }
  0xc6   :  { %v104_v54 = vpop.xlane.xlu0 %103  ;;  %v106_v55 = vpop.xlane.xlu1 %105 }
  0xc7   :  { %v152_v56 = vmul.f32 0.0078125, %v104_v54  ;;  %v214_v57 = vmul.f32 %v1259_v53, %v1259_v53  ;;  %v153_v58 = vmul.f32 0.0078125, %v106_v55  ;;  %v215_v15 = vmul.f32 %v1262_v12, %v1262_v12 }
  0xc9   :  { %v1269_v61 = vsub.f32 %v1142_v16, %v152_v56  ;;  %258 = vadd.xlane.f32.xlu1 %v213_v13  ;;  %260 = vadd.xlane.f32.xlu0 %v214_v57  ;;  %v1272_v14 = vsub.f32 %v1144_v17, %v153_v58 }
  0xca   :  { %v108_v62 = vpop.xlane.xlu0 %107  ;;  %v110_v63 = vpop.xlane.xlu1 %109 }
  0xcb   :  { %v154_v0 = vmul.f32 0.0078125, %v108_v62  ;;  %v216_v1 = vmul.f32 %v1269_v61, %v1269_v61  ;;  %v155_v2 = vmul.f32 0.0078125, %v110_v63  ;;  %v217_v17 = vmul.f32 %v1272_v14, %v1272_v14 }
  0xcd   :  { %v1279_v5 = vsub.f32 %v1148_v18, %v154_v0  ;;  %262 = vadd.xlane.f32.xlu1 %v215_v15  ;;  %264 = vadd.xlane.f32.xlu0 %v216_v1  ;;  %v1282_v16 = vsub.f32 %v1150_v19, %v155_v2 }
  0xce   :  { %v112_v6 = vpop.xlane.xlu0 %111  ;;  %v114_v7 = vpop.xlane.xlu1 %113 }
  0xcf   :  { %v156_v32 = vmul.f32 0.0078125, %v112_v6  ;;  %v218_v33 = vmul.f32 %v1279_v5, %v1279_v5  ;;  %v157_v34 = vmul.f32 0.0078125, %v114_v7  ;;  %v219_v19 = vmul.f32 %v1282_v16, %v1282_v16 }
  0xd1   :  { %v1289_v9 = vsub.f32 %v1154_v20, %v156_v32  ;;  %266 = vadd.xlane.f32.xlu1 %v217_v17  ;;  %268 = vadd.xlane.f32.xlu0 %v218_v33  ;;  %v1292_v18 = vsub.f32 %v1156_v21, %v157_v34 }
  0xd2   :  { %v116_v38 = vpop.xlane.xlu0 %115  ;;  %v118_v39 = vpop.xlane.xlu1 %117 }
  0xd3   :  { %v158_v40 = vmul.f32 0.0078125, %v116_v38  ;;  %v220_v41 = vmul.f32 %v1289_v9, %v1289_v9  ;;  %v159_v42 = vmul.f32 0.0078125, %v118_v39  ;;  %v221_v21 = vmul.f32 %v1292_v18, %v1292_v18 }
  0xd5   :  { %v1299_v11 = vsub.f32 %v1160_v22, %v158_v40  ;;  %270 = vadd.xlane.f32.xlu1 %v219_v19  ;;  %272 = vadd.xlane.f32.xlu0 %v220_v41  ;;  %v1302_v20 = vsub.f32 %v1162_v23, %v159_v42  ;;  %v744_v41 = vlaneseq }
  0xd6   :  { %v120_v46 = vpop.xlane.xlu0 %119  ;;  %v122_v47 = vpop.xlane.xlu1 %121 }
  0xd7   :  { %v160_v48 = vmul.f32 0.0078125, %v120_v46  ;;  %v222_v49 = vmul.f32 %v1299_v11, %v1299_v11  ;;  %v161_v50 = vmul.f32 0.0078125, %v122_v47  ;;  %v223_v23 = vmul.f32 %v1302_v20, %v1302_v20 }
  0xd8   :  { %v745_v47 = vshrl.u32 %v744_v41, 7 }
  0xd9   :  { %v1309_v13 = vsub.f32 %v1166_v24, %v160_v48  ;;  %274 = vadd.xlane.f32.xlu1 %v221_v21  ;;  %276 = vadd.xlane.f32.xlu0 %v222_v49  ;;  %v1312_v22 = vsub.f32 %v1168_v25, %v161_v50 }
  0xda   :  { %v124_v54 = vpop.xlane.xlu0 %123  ;;  %v126_v55 = vpop.xlane.xlu1 %125 }
  0xdb   :  { %v162_v56 = vmul.f32 0.0078125, %v124_v54  ;;  %v224_v57 = vmul.f32 %v1309_v13, %v1309_v13  ;;  %v163_v58 = vmul.f32 0.0078125, %v126_v55  ;;  %v225_v25 = vmul.f32 %v1312_v22, %v1312_v22 }
  0xdc   :  { %v746_v54 = vsub.s32 0, %v745_v47  ;;  %v782_v55 = vsub.s32 1, %v745_v47 }
  0xdd   :  { %v1319_v15 = vsub.f32 %v1172_v26, %v162_v56  ;;  %278 = vadd.xlane.f32.xlu1 %v223_v23  ;;  %280 = vadd.xlane.f32.xlu0 %v224_v57  ;;  %v1322_v24 = vsub.f32 %v1174_v27, %v163_v58  ;;  %v70_v56 = vld [vmem:[#allocation5] sm:$0x3] }
  0xde   :  { %v128_v62 = vpop.xlane.xlu0 %127  ;;  %v130_v63 = vpop.xlane.xlu1 %129 }
  0xdf   :  { %v164_v0 = vmul.f32 0.0078125, %v128_v62  ;;  %v226_v1 = vmul.f32 %v1319_v15, %v1319_v15  ;;  %v165_v2 = vmul.f32 0.0078125, %v130_v63  ;;  %v227_v27 = vmul.f32 %v1322_v24, %v1322_v24 }
  0xe0   :  { %v1366_v63 = vrot.slane %v70_v56, %v746_v54 }
  0xe1   :  { %v1329_v17 = vsub.f32 %v1178_v28, %v164_v0  ;;  %282 = vadd.xlane.f32.xlu1 %v225_v25  ;;  %284 = vadd.xlane.f32.xlu0 %v226_v1  ;;  %v1332_v26 = vsub.f32 %v1180_v29, %v165_v2  ;;  %v1368_v0 = vrot.slane %v70_v56, %v782_v55 }
  0xe2   :  { %v132_v6 = vpop.xlane.xlu0 %131  ;;  %v134_v7 = vpop.xlane.xlu1 %133 }
  0xe3   :  { %1941 = vst [vmem:[#allocation11_spill] sm:$0xff] %v1332_v26  ;;  %v166_v32 = vmul.f32 0.0078125, %v132_v6  ;;  %v228_v33 = vmul.f32 %v1329_v17, %v1329_v17  ;;  %v167_v34 = vmul.f32 0.0078125, %v134_v7  ;;  %v229_v29 = vmul.f32 %v1332_v26, %v1332_v26 }
  0xe5   :  { %v1339_v19 = vsub.f32 %v1184_v30, %v166_v32  ;;  %286 = vadd.xlane.f32.xlu1 %v227_v27  ;;  %288 = vadd.xlane.f32.xlu0 %v228_v33  ;;  %v1342_v28 = vsub.f32 %v1186_v31, %v167_v34 }
  0xe7   :  { %1942 = vst [vmem:[#allocation12_spill] sm:$0xff] %v1339_v19  ;;  %1943 = vst [vmem:[#allocation13_spill] sm:$0xff] %v1342_v28  ;;  %v230_v38 = vmul.f32 %v1339_v19, %v1339_v19  ;;  %v231_v39 = vmul.f32 %v1342_v28, %v1342_v28 }
  0xe9   :  { %290 = vadd.xlane.f32.xlu1 %v229_v29  ;;  %292 = vadd.xlane.f32.xlu0 %v230_v38 }
  0xed   :  { %294 = vadd.xlane.f32.xlu1 %v231_v39 }
 0x136   :  { %v233_v40 = vpop.xlane.xlu0 %232 }
 0x137   :  { %v296_v30 = vmul.f32 0.007874016, %v233_v40 }
 0x139   :  { %871 = vrsqrt.f32 %v296_v30  ;;  %vm330_vm0 = vcmp.eq.f32.partialorder %v296_v30, inf  ;;  %vm332_vm1 = vcmp.eq.f32.partialorder %v296_v30, 0.0  ;;  %v333_v2 = vand.u32 2147483648, %v296_v30 }
 0x13a   :  { %v235_v42 = vpop.xlane.xlu1 %234  ;;  %v237_v21 = vpop.xlane.xlu0 %236 }
 0x13b   :  { %v1350_v31 = vmul.f32 0.007874016, %v235_v42  ;;  %v1352_v46 = vmul.f32 0.007874016, %v237_v21 }
 0x13d   :  { %873 = vrsqrt.f32 %v1350_v31  ;;  %vm337_vm2 = vcmp.eq.f32.partialorder %v1350_v31, inf  ;;  %vm339_vm3 = vcmp.eq.f32.partialorder %v1350_v31, 0.0  ;;  %v340_v34 = vand.u32 2147483648, %v1350_v31 }
 0x13e   :  { %875 = vrsqrt.f32 %v1352_v46  ;;  %v239_v48 = vpop.xlane.xlu1 %238  ;;  %v241_v49 = vpop.xlane.xlu0 %240  ;;  %vm344_vm4 = vcmp.eq.f32.partialorder %v1352_v46, inf  ;;  %vm346_vm5 = vcmp.eq.f32.partialorder %v1352_v46, 0.0  ;;  %v347_v38 = vand.u32 2147483648, %v1352_v46 }
 0x13f   :  { %v1356_v50 = vmul.f32 0.007874016, %v239_v48  ;;  %v1358_v23 = vmul.f32 0.007874016, %v241_v49 }
 0x141   :  { %877 = vrsqrt.f32 %v1356_v50  ;;  %vm351_vm6 = vcmp.eq.f32.partialorder %v1356_v50, inf  ;;  %vm353_vm7 = vcmp.eq.f32.partialorder %v1356_v50, 0.0  ;;  %v354_v41 = vand.u32 2147483648, %v1356_v50 }
 0x142   :  { %879 = vrsqrt.f32 %v1358_v23  ;;  %v243_v57 = vpop.xlane.xlu1 %242  ;;  %v245_v58 = vpop.xlane.xlu0 %244  ;;  %vm358_vm8 = vcmp.eq.f32.partialorder %v1358_v23, inf  ;;  %vm360_vm9 = vcmp.eq.f32.partialorder %v1358_v23, 0.0  ;;  %v361_v54 = vand.u32 2147483648, %v1358_v23 }
 0x143   :  { %v1362_v25 = vmul.f32 0.007874016, %v243_v57  ;;  %v1364_v62 = vmul.f32 0.007874016, %v245_v58 }
 0x145   :  { %881 = vrsqrt.f32 %v1362_v25  ;;  %vm365_vm10 = vcmp.eq.f32.partialorder %v1362_v25, inf  ;;  %vm367_vm11 = vcmp.eq.f32.partialorder %v1362_v25, 0.0  ;;  %vm372_vm12 = vcmp.eq.f32.partialorder %v1364_v62, inf }
 0x146   :  { %v872_v1 = vpop.eup %871  ;;  %883 = vrsqrt.f32 %v1364_v62  ;;  %v247_v27 = vpop.xlane.xlu1 %246  ;;  %vm374_vm13 = vcmp.eq.f32.partialorder %v1364_v62, 0.0 }
 0x147   :  { %v249_v6 = vpop.xlane.xlu0 %248  ;;  %v329_v7 = vmul.f32 %v872_v1, %v296_v30  ;;  %v1373_v32 = vmul.f32 0.007874016, %v247_v27  ;;  %v368_v27 = vand.u32 2147483648, %v1362_v25 }
 0x148   :  { %v1375_v33 = vmul.f32 0.007874016, %v249_v6 }
 0x149   :  { %v331_v29 = vsel %vm330_vm0, %v296_v30, %v329_v7  ;;  %885 = vrsqrt.f32 %v1373_v32  ;;  %vm379_vm14 = vcmp.eq.f32.partialorder %v1373_v32, inf  ;;  %vm381_vm15 = vcmp.eq.f32.partialorder %v1373_v32, 0.0 }
 0x14a   :  { %v874_v39 = vpop.eup %873  ;;  %v334_v40 = vsel %vm332_vm1, %v333_v2, %v331_v29  ;;  %887 = vrsqrt.f32 %v1375_v33  ;;  %v251_v42 = vpop.xlane.xlu1 %250  ;;  %vm386_vm0 = vcmp.eq.f32.partialorder %v1375_v33, inf  ;;  %vm388_vm1 = vcmp.eq.f32.partialorder %v1375_v33, 0.0 }
 0x14b   :  { %v253_v21 = vpop.xlane.xlu0 %252  ;;  %v876_v47 = vpop.eup %875  ;;  %v1388_v48 = vadd.f32 1e-06, %v334_v40  ;;  %v336_v49 = vmul.f32 %v874_v39, %v1350_v31  ;;  %v1395_v55 = vmul.f32 0.007874016, %v251_v42 }
 0x14c   :  { %v343_v30 = vmul.f32 %v876_v47, %v1352_v46  ;;  %v1397_v56 = vmul.f32 0.007874016, %v253_v21 }
 0x14d   :  { %889 = vrcp.f32 %v1388_v48  ;;  %v338_v57 = vsel %vm337_vm2, %v1350_v31, %v336_v49  ;;  %vm393_vm2 = vcmp.eq.f32.partialorder %v1395_v55, inf }
 0x14e   :  { %v878_v58 = vpop.eup %877  ;;  %v341_v1 = vsel %vm339_vm3, %v340_v34, %v338_v57  ;;  %v345_v2 = vsel %vm344_vm4, %v1352_v46, %v343_v30  ;;  %891 = vrsqrt.f32 %v1395_v55  ;;  %v255_v31 = vpop.xlane.xlu1 %254  ;;  %vm395_vm3 = vcmp.eq.f32.partialorder %v1395_v55, 0.0 }
 0x14f   :  { %v880_v6 = vpop.eup %879  ;;  %v1412_v7 = vadd.f32 1e-06, %v341_v1  ;;  %v348_v29 = vsel %vm346_vm5, %v347_v38, %v345_v2  ;;  %v350_v39 = vmul.f32 %v878_v58, %v1356_v50  ;;  %893 = vrsqrt.f32 %v1397_v56  ;;  %v257_v42 = vpop.xlane.xlu0 %256 }
 0x150   :  { %v1418_v34 = vadd.f32 1e-06, %v348_v29  ;;  %v357_v40 = vmul.f32 %v880_v6, %v1358_v23  ;;  %v375_v38 = vand.u32 2147483648, %v1364_v62  ;;  %v1441_v2 = vmul.f32 0.007874016, %v255_v31 }
 0x151   :  { %895 = vrcp.f32 %v1412_v7  ;;  %v352_v46 = vsel %vm351_vm6, %v1356_v50, %v350_v39  ;;  %v1447_v29 = vmul.f32 0.007874016, %v257_v42  ;;  %vm400_vm4 = vcmp.eq.f32.partialorder %v1397_v56, inf }
 0x152   :  { %v882_v21 = vpop.eup %881  ;;  %897 = vrcp.f32 %v1418_v34  ;;  %v355_v47 = vsel %vm353_vm7, %v354_v41, %v352_v46  ;;  %v359_v49 = vsel %vm358_vm8, %v1358_v23, %v357_v40  ;;  %v382_v41 = vand.u32 2147483648, %v1373_v32  ;;  %v259_v23 = vpop.xlane.xlu1 %258 }
 0x153   :  { %v884_v30 = vpop.eup %883  ;;  %v1436_v57 = vadd.f32 1e-06, %v355_v47  ;;  %v362_v58 = vsel %vm360_vm9, %v361_v54, %v359_v49  ;;  %v364_v1 = vmul.f32 %v882_v21, %v1362_v25  ;;  %v389_v46 = vand.u32 2147483648, %v1375_v33 }
 0x154   :  { %v1443_v6 = vadd.f32 1e-06, %v362_v58  ;;  %v371_v50 = vmul.f32 %v884_v30, %v1364_v62  ;;  %vm402_vm5 = vcmp.eq.f32.partialorder %v1397_v56, 0.0  ;;  %vm407_vm6 = vcmp.eq.f32.partialorder %v1441_v2, inf }
 0x155   :  { %899 = vrcp.f32 %v1436_v57  ;;  %v366_v39 = vsel %vm365_vm10, %v1362_v25, %v364_v1  ;;  %vm409_vm7 = vcmp.eq.f32.partialorder %v1441_v2, 0.0  ;;  %vm414_vm8 = vcmp.eq.f32.partialorder %v1447_v29, inf }
 0x156   :  { %v886_v54 = vpop.eup %885  ;;  %901 = vrcp.f32 %v1443_v6  ;;  %v369_v31 = vsel %vm367_vm11, %v368_v27, %v366_v39  ;;  %v373_v40 = vsel %vm372_vm12, %v1364_v62, %v371_v50  ;;  %v1472_v27 = vmul.f32 0.007874016, %v259_v23  ;;  %v261_v39 = vpop.xlane.xlu0 %260 }
 0x157   :  { %v888_v42 = vpop.eup %887  ;;  %v1462_v21 = vadd.f32 1e-06, %v369_v31  ;;  %v376_v47 = vsel %vm374_vm13, %v375_v38, %v373_v40  ;;  %v378_v49 = vmul.f32 %v886_v54, %v1373_v32  ;;  %903 = vrsqrt.f32 %v1441_v2 }
 0x158   :  { %v1468_v30 = vadd.f32 1e-06, %v376_v47  ;;  %v385_v25 = vmul.f32 %v888_v42, %v1375_v33  ;;  %905 = vrsqrt.f32 %v1447_v29  ;;  %v396_v50 = vand.u32 2147483648, %v1395_v55  ;;  %v263_v42 = vpop.xlane.xlu1 %262 }
 0x159   :  { %907 = vrcp.f32 %v1462_v21  ;;  %v380_v58 = vsel %vm379_vm14, %v1373_v32, %v378_v49  ;;  %vm416_vm9 = vcmp.eq.f32.partialorder %v1447_v29, 0.0  ;;  %vm421_vm10 = vcmp.eq.f32.partialorder %v1472_v27, inf }
 0x15a   :  { %v890_v62 = vpop.eup %889  ;;  %909 = vrcp.f32 %v1468_v30  ;;  %v383_v38 = vsel %vm381_vm15, %v382_v41, %v380_v58  ;;  %v387_v1 = vsel %vm386_vm0, %v1375_v33, %v385_v25  ;;  %v1500_v25 = vmul.f32 0.007874016, %v261_v39 }
 0x15b   :  { %v892_v23 = vpop.eup %891  ;;  %v616_v54 = vmul.f32 %v890_v62, %v1388_v48  ;;  %v1488_v31 = vadd.f32 1e-06, %v383_v38  ;;  %v390_v40 = vsel %vm388_vm1, %v389_v46, %v387_v1  ;;  %911 = vrsqrt.f32 %v1472_v27 }
 0x15c   :  { %v1493_v32 = vadd.f32 1e-06, %v390_v40  ;;  %v392_v41 = vmul.f32 %v892_v23, %v1395_v55  ;;  %v894_v47 = vpop.eup %893  ;;  %v403_v48 = vand.u32 2147483648, %v1397_v56  ;;  %v1508_v38 = vmul.f32 0.007874016, %v263_v42 }
 0x15d   :  { %v648_v49 = vsub.f32 2.0, %v616_v54  ;;  %913 = vrcp.f32 %v1488_v31  ;;  %v399_v58 = vmul.f32 %v894_v47, %v1397_v56  ;;  %v410_v47 = vand.u32 2147483648, %v1441_v2 }
 0x15e   :  { %v896_v33 = vpop.eup %895  ;;  %915 = vrcp.f32 %v1493_v32  ;;  %v394_v46 = vsel %vm393_vm2, %v1395_v55, %v392_v41  ;;  %vm423_vm11 = vcmp.eq.f32.partialorder %v1472_v27, 0.0  ;;  %vm428_vm12 = vcmp.eq.f32.partialorder %v1500_v25, inf }
 0x15f   :  { %v898_v1 = vpop.eup %897  ;;  %v680_v23 = vmul.f32 %v890_v62, %v648_v49  ;;  %v617_v54 = vmul.f32 %v896_v33, %v1412_v7  ;;  %v397_v39 = vsel %vm395_vm3, %v396_v50, %v394_v46  ;;  %917 = vrsqrt.f32 %v1500_v25  ;;  %v265_v49 = vpop.xlane.xlu0 %264 }
 0x160   :  { %v618_v40 = vmul.f32 %v898_v1, %v1418_v34  ;;  %v1516_v41 = vadd.f32 1e-06, %v397_v39  ;;  %v401_v42 = vsel %vm400_vm4, %v1397_v56, %v399_v58  ;;  %vm430_vm13 = vcmp.eq.f32.partialorder %v1500_v25, 0.0 }
 0x161   :  { %v712_v62 = vmul.f32 %v680_v23, %v1191_v36  ;;  %v649_v7 = vsub.f32 2.0, %v617_v54  ;;  %v404_v55 = vsel %vm402_vm5, %v403_v48, %v401_v42  ;;  %v1537_v42 = vmul.f32 0.007874016, %v265_v49 }
 0x162   :  { %v900_v34 = vpop.eup %899  ;;  %v650_v46 = vsub.f32 2.0, %v618_v40  ;;  %919 = vrcp.f32 %v1516_v41  ;;  %v1528_v39 = vadd.f32 1e-06, %v404_v55  ;;  %vm435_vm14 = vcmp.eq.f32.partialorder %v1508_v38, inf }
 0x163   :  { %v902_v28 = vpop.eup %901  ;;  %v748_v36 = vmul.f32 %v1366_v63, %v712_v62  ;;  %v681_v23 = vmul.f32 %v896_v33, %v649_v7  ;;  %v619_v56 = vmul.f32 %v900_v34, %v1436_v57  ;;  %921 = vrsqrt.f32 %v1508_v38 }
 0x164   :  { %v904_v48 = vpop.eup %903  ;;  %v682_v54 = vmul.f32 %v898_v1, %v650_v46  ;;  %v620_v40 = vmul.f32 %v902_v28, %v1443_v6  ;;  %923 = vrcp.f32 %v1528_v39  ;;  %v431_v6 = vand.u32 2147483648, %v1500_v25 }
 0x165   :  { %v906_v55 = vpop.eup %905  ;;  %v784_v58 = vadd.f32 %v1368_v0, %v748_v36  ;;  %v713_v62 = vmul.f32 %v681_v23, %v1199_v43  ;;  %v651_v33 = vsub.f32 2.0, %v619_v56  ;;  %v406_v57 = vmul.f32 %v904_v48, %v1441_v2 }
 0x166   :  { %v908_v7 = vpop.eup %907  ;;  %v714_v50 = vmul.f32 %v682_v54, %v1194_v37  ;;  %v652_v19 = vsub.f32 2.0, %v620_v40  ;;  %v413_v1 = vmul.f32 %v906_v55, %v1447_v29  ;;  %vm437_vm15 = vcmp.eq.f32.partialorder %v1508_v38, 0.0 }
 0x167   :  { %v910_v46 = vpop.eup %909  ;;  %816 = vst [vmem:[#allocation7] sm:$0xff] %v784_v58  ;;  %v749_v49 = vmul.f32 %v1366_v63, %v713_v62  ;;  %v683_v26 = vmul.f32 %v900_v34, %v651_v33  ;;  %v621_v36 = vmul.f32 %v908_v7, %v1462_v21  ;;  %v408_v43 = vsel %vm407_vm6, %v1441_v2, %v406_v57 }
 0x168   :  { %v750_v37 = vmul.f32 %v1366_v63, %v714_v50  ;;  %v684_v23 = vmul.f32 %v902_v28, %v652_v19  ;;  %v622_v56 = vmul.f32 %v910_v46, %v1468_v30  ;;  %v411_v48 = vsel %vm409_vm7, %v410_v47, %v408_v43  ;;  %v912_v34 = vpop.eup %911 }
 0x169   :  { %v785_v21 = vadd.f32 %v1368_v0, %v749_v49  ;;  %v715_v58 = vmul.f32 %v683_v26, %v1202_v44  ;;  %v653_v54 = vsub.f32 2.0, %v621_v36  ;;  %v1559_v40 = vadd.f32 1e-06, %v411_v48  ;;  %v267_v36 = vpop.xlane.xlu1 %266 }
 0x16a   :  { %v914_v55 = vpop.eup %913  ;;  %v786_v19 = vadd.f32 %v1368_v0, %v750_v37  ;;  %v716_v28 = vmul.f32 %v684_v23, %v1209_v51  ;;  %v654_v30 = vsub.f32 2.0, %v622_v56  ;;  %v415_v2 = vsel %vm414_vm8, %v1447_v29, %v413_v1  ;;  %v269_v23 = vpop.xlane.xlu0 %268 }
 0x16b   :  { %v916_v47 = vpop.eup %915  ;;  %817 = vst [vmem:[#allocation7 + $0x8] sm:$0xff] %v785_v21  ;;  %v751_v50 = vmul.f32 %v1366_v63, %v715_v58  ;;  %v685_v44 = vmul.f32 %v908_v7, %v653_v54  ;;  %v623_v26 = vmul.f32 %v914_v55, %v1488_v31  ;;  %925 = vrcp.f32 %v1559_v40 }
 0x16c   :  { %v918_v62 = vpop.eup %917  ;;  %818 = vst [vmem:[#allocation7 + $0x10] sm:$0xff] %v786_v19  ;;  %v752_v51 = vmul.f32 %v1366_v63, %v716_v28  ;;  %v686_v33 = vmul.f32 %v910_v46, %v654_v30  ;;  %v624_v57 = vmul.f32 %v916_v47, %v1493_v32  ;;  %v1944_v1 = vand.u32 2147483648, %v1447_v29 }
 0x16d   :  { %v787_v7 = vadd.f32 %v1368_v0, %v751_v50  ;;  %v717_v31 = vmul.f32 %v685_v44, %v1212_v52  ;;  %v655_v43 = vsub.f32 2.0, %v623_v26  ;;  %v420_v48 = vmul.f32 %v912_v34, %v1472_v27 }
 0x16e   :  { %v418_v49 = vsel %vm416_vm9, %v1944_v1, %v415_v2  ;;  %v788_v46 = vadd.f32 %v1368_v0, %v752_v51  ;;  %v718_v32 = vmul.f32 %v686_v33, %v1219_v59  ;;  %v656_v56 = vsub.f32 2.0, %v624_v57  ;;  %v271_v33 = vpop.xlane.xlu1 %270 }
 0x16f   :  { %v1579_v37 = vadd.f32 1e-06, %v418_v49  ;;  %v920_v29 = vpop.eup %919  ;;  %819 = vst [vmem:[#allocation7 + $0x18] sm:$0xff] %v787_v7  ;;  %v753_v21 = vmul.f32 %v1366_v63, %v717_v31  ;;  %v687_v58 = vmul.f32 %v914_v55, %v655_v43  ;;  %v427_v52 = vmul.f32 %v918_v62, %v1500_v25  ;;  %v273_v49 = vpop.xlane.xlu0 %272 }
 0x170   :  { %v922_v54 = vpop.eup %921  ;;  %820 = vst [vmem:[#allocation7 + $0x20] sm:$0xff] %v788_v46  ;;  %v754_v19 = vmul.f32 %v1366_v63, %v718_v32  ;;  %v688_v28 = vmul.f32 %v916_v47, %v656_v56  ;;  %v625_v59 = vmul.f32 %v920_v29, %v1516_v41  ;;  %v422_v34 = vsel %vm421_vm10, %v1472_v27, %v420_v48 }
 0x171   :  { %927 = vrcp.f32 %v1579_v37  ;;  %v924_v30 = vpop.eup %923  ;;  %v789_v2 = vadd.f32 %v1368_v0, %v753_v21  ;;  %v719_v55 = vmul.f32 %v687_v58, %v1222_v60  ;;  %v1945_v50 = vand.u32 2147483648, %v1472_v27 }
 0x172   :  { %v429_v47 = vsel %vm428_vm12, %v1500_v25, %v427_v52  ;;  %v790_v41 = vadd.f32 %v1368_v0, %v754_v19  ;;  %v720_v26 = vmul.f32 %v688_v28, %v1229_v3  ;;  %v657_v62 = vsub.f32 2.0, %v625_v59 }
 0x173   :  { %v425_v44 = vsel %vm423_vm11, %v1945_v50, %v422_v34  ;;  %v626_v51 = vmul.f32 %v924_v30, %v1528_v39  ;;  %821 = vst [vmem:[#allocation7 + $0x28] sm:$0xff] %v789_v2  ;;  %v755_v60 = vmul.f32 %v1366_v63, %v719_v55  ;;  %v432_v27 = vsel %vm430_vm13, %v431_v6, %v429_v47  ;;  %v277_v59 = vpop.xlane.xlu0 %276 }
 0x174   :  { %v1606_v57 = vadd.f32 1e-06, %v425_v44  ;;  %v434_v1 = vmul.f32 %v922_v54, %v1508_v38  ;;  %822 = vst [vmem:[#allocation7 + $0x30] sm:$0xff] %v790_v41  ;;  %v756_v3 = vmul.f32 %v1366_v63, %v720_v26  ;;  %v689_v7 = vmul.f32 %v920_v29, %v657_v62  ;;  %v275_v54 = vpop.xlane.xlu1 %274 }
 0x175   :  { %v658_v31 = vsub.f32 2.0, %v626_v51  ;;  %v566_v39 = vadd.f32 1e-06, %v432_v27  ;;  %v791_v43 = vadd.f32 %v1368_v0, %v755_v60  ;;  %v438_v25 = vand.u32 2147483648, %v1508_v38 }
 0x176   :  { %929 = vrcp.f32 %v1606_v57  ;;  %v436_v46 = vsel %vm435_vm14, %v1508_v38, %v434_v1  ;;  %v792_v6 = vadd.f32 %v1368_v0, %v756_v3  ;;  %v721_v32 = vmul.f32 %v689_v7, %v1232_v4 }
 0x177   :  { %v690_v56 = vmul.f32 %v924_v30, %v658_v31  ;;  %931 = vrcp.f32 %v566_v39  ;;  %823 = vst [vmem:[#allocation7 + $0x38] sm:$0xff] %v791_v43  ;;  %v439_v48 = vsel %vm437_vm15, %v438_v25, %v436_v46  ;;  %v1630_v4 = vmul.f32 0.007874016, %v267_v36  ;;  %v281_v41 = vpop.xlane.xlu0 %280 }
 0x178   :  { %933 = vrsqrt.f32 %v1537_v42  ;;  %v926_v29 = vpop.eup %925  ;;  %824 = vst [vmem:[#allocation7 + $0x40] sm:$0xff] %v792_v6  ;;  %v757_v21 = vmul.f32 %v1366_v63, %v721_v32  ;;  %v1627_v52 = vadd.f32 1e-06, %v439_v48  ;;  %v1632_v28 = vmul.f32 0.007874016, %v269_v23  ;;  %v279_v50 = vpop.xlane.xlu1 %278 }
 0x179   :  { %v722_v58 = vmul.f32 %v690_v56, %v1239_v35  ;;  %v627_v19 = vmul.f32 %v926_v29, %v1559_v40  ;;  %v1637_v30 = vmul.f32 0.007874016, %v271_v33  ;;  %v1640_v35 = vmul.f32 0.007874016, %v273_v49 }
 0x17a   :  { %v793_v38 = vadd.f32 %v1368_v0, %v757_v21  ;;  %935 = vrcp.f32 %v1627_v52  ;;  %vm442_vm0 = vcmp.eq.f32.partialorder %v1537_v42, inf  ;;  %v1649_v26 = vmul.f32 0.007874016, %v275_v54 }
 0x17b   :  { %v758_v34 = vmul.f32 %v1366_v63, %v722_v58  ;;  %v659_v2 = vsub.f32 2.0, %v627_v19  ;;  %937 = vrsqrt.f32 %v1630_v4  ;;  %v1651_v62 = vmul.f32 0.007874016, %v277_v59 }
 0x17c   :  { %825 = vst [vmem:[#allocation7 + $0x48] sm:$0xff] %v793_v38  ;;  %939 = vrsqrt.f32 %v1632_v28  ;;  %vm444_vm1 = vcmp.eq.f32.partialorder %v1537_v42, 0.0  ;;  %vm449_vm2 = vcmp.eq.f32.partialorder %v1630_v4, inf  ;;  %v1660_v27 = vmul.f32 0.007874016, %v281_v41 }
 0x17d   :  { %v794_v40 = vadd.f32 %v1368_v0, %v758_v34  ;;  %v691_v36 = vmul.f32 %v926_v29, %v659_v2  ;;  %941 = vrsqrt.f32 %v1637_v30  ;;  %vm451_vm3 = vcmp.eq.f32.partialorder %v1630_v4, 0.0  ;;  %v283_v34 = vpop.xlane.xlu1 %282 }
 0x17e   :  { %v928_v55 = vpop.eup %927  ;;  %943 = vrsqrt.f32 %v1640_v35  ;;  %v452_v46 = vand.u32 2147483648, %v1630_v4  ;;  %vm456_vm4 = vcmp.eq.f32.partialorder %v1632_v28, inf  ;;  %vm458_vm5 = vcmp.eq.f32.partialorder %v1632_v28, 0.0 }
 0x17f   :  { %v628_v23 = vmul.f32 %v928_v55, %v1579_v37  ;;  %826 = vst [vmem:[#allocation7 + $0x50] sm:$0xff] %v794_v40  ;;  %v723_v44 = vmul.f32 %v691_v36, %v1242_v8  ;;  %v1655_v37 = vmul.f32 0.007874016, %v279_v50  ;;  %v445_v8 = vand.u32 2147483648, %v1537_v42 }
 0x180   :  { %945 = vrsqrt.f32 %v1649_v26  ;;  %v459_v32 = vand.u32 2147483648, %v1632_v28  ;;  %vm463_vm6 = vcmp.eq.f32.partialorder %v1637_v30, inf  ;;  %vm465_vm7 = vcmp.eq.f32.partialorder %v1637_v30, 0.0 }
 0x181   :  { %v660_v47 = vsub.f32 2.0, %v628_v23  ;;  %v759_v51 = vmul.f32 %v1366_v63, %v723_v44  ;;  %947 = vrsqrt.f32 %v1651_v62  ;;  %vm470_vm8 = vcmp.eq.f32.partialorder %v1640_v35, inf }
 0x182   :  { %949 = vrsqrt.f32 %v1655_v37  ;;  %vm472_vm9 = vcmp.eq.f32.partialorder %v1640_v35, 0.0  ;;  %v473_v38 = vand.u32 2147483648, %v1640_v35  ;;  %v480_v23 = vand.u32 2147483648, %v1649_v26 }
 0x183   :  { %v692_v33 = vmul.f32 %v928_v55, %v660_v47  ;;  %v930_v60 = vpop.eup %929  ;;  %v795_v49 = vadd.f32 %v1368_v0, %v759_v51  ;;  %951 = vrsqrt.f32 %v1660_v27  ;;  %vm477_vm10 = vcmp.eq.f32.partialorder %v1649_v26, inf }
 0x184   :  { %v932_v1 = vpop.eup %931  ;;  %v629_v7 = vmul.f32 %v930_v60, %v1606_v57  ;;  %vm484_vm11 = vcmp.eq.f32.partialorder %v1651_v62, inf  ;;  %v487_v44 = vand.u32 2147483648, %v1651_v62  ;;  %vm479_vm12 = vcmp.eq.f32.partialorder %v1649_v26, 0.0 }
 0x185   :  { %v724_v3 = vmul.f32 %v692_v33, %v1249_v45  ;;  %v934_v31 = vpop.eup %933  ;;  %v630_v43 = vmul.f32 %v932_v1, %v566_v39  ;;  %827 = vst [vmem:[#allocation7 + $0x58] sm:$0xff] %v795_v49  ;;  %v466_v39 = vand.u32 2147483648, %v1637_v30  ;;  %vm486_vm13 = vcmp.eq.f32.partialorder %v1651_v62, 0.0 }
 0x186   :  { %v661_v6 = vsub.f32 2.0, %v629_v7  ;;  %v441_v45 = vmul.f32 %v934_v31, %v1537_v42  ;;  %vm491_vm14 = vcmp.eq.f32.partialorder %v1655_v37, inf  ;;  %vm493_vm15 = vcmp.eq.f32.partialorder %v1655_v37, 0.0 }
 0x187   :  { %v760_v25 = vmul.f32 %v1366_v63, %v724_v3  ;;  %v662_v57 = vsub.f32 2.0, %v630_v43  ;;  %v936_v56 = vpop.eup %935 }
 0x188   :  { %v693_v29 = vmul.f32 %v930_v60, %v661_v6  ;;  %v443_v21 = vsel %vm442_vm0, %v1537_v42, %v441_v45  ;;  %v938_v58 = vpop.eup %937  ;;  %v631_v19 = vmul.f32 %v936_v56, %v1627_v52  ;;  %vm498_vm0 = vcmp.eq.f32.partialorder %v1660_v27, inf }
 0x189   :  { %v796_v48 = vadd.f32 %v1368_v0, %v760_v25  ;;  %v694_v54 = vmul.f32 %v932_v1, %v662_v57  ;;  %v446_v59 = vsel %vm444_vm1, %v445_v8, %v443_v21  ;;  %v940_v2 = vpop.eup %939  ;;  %v448_v36 = vmul.f32 %v938_v58, %v1630_v4 }
 0x18a   :  { %v725_v55 = vmul.f32 %v693_v29, %v1252_v10  ;;  %v1689_v40 = vadd.f32 1e-06, %v446_v59  ;;  %v663_v50 = vsub.f32 2.0, %v631_v19  ;;  %v455_v42 = vmul.f32 %v940_v2, %v1632_v28  ;;  %v942_v47 = vpop.eup %941 }
 0x18b   :  { %828 = vst [vmem:[#allocation7 + $0x60] sm:$0xff] %v796_v48  ;;  %v726_v52 = vmul.f32 %v694_v54, %v1259_v53  ;;  %v450_v41 = vsel %vm449_vm2, %v1630_v4, %v448_v36  ;;  %v1705_v53 = vmul.f32 0.007874016, %v283_v34  ;;  %v944_v51 = vpop.eup %943  ;;  %v462_v31 = vmul.f32 %v942_v47, %v1637_v30 }
 0x18c   :  { %v761_v10 = vmul.f32 %v1366_v63, %v725_v55  ;;  %953 = vrcp.f32 %v1689_v40  ;;  %v695_v60 = vmul.f32 %v936_v56, %v663_v50  ;;  %v453_v8 = vsel %vm451_vm3, %v452_v46, %v450_v41 }
 0x18d   :  { %v762_v33 = vmul.f32 %v1366_v63, %v726_v52  ;;  %v457_v1 = vsel %vm456_vm4, %v1632_v28, %v455_v42  ;;  %v1714_v3 = vadd.f32 1e-06, %v453_v8  ;;  %v469_v4 = vmul.f32 %v944_v51, %v1640_v35  ;;  %v946_v46 = vpop.eup %945  ;;  %v285_v28 = vpop.xlane.xlu0 %284 }
 0x18e   :  { %v797_v49 = vadd.f32 %v1368_v0, %v761_v10  ;;  %v460_v7 = vsel %vm458_vm5, %v459_v32, %v457_v1  ;;  %v727_v25 = vmul.f32 %v695_v60, %v1262_v12  ;;  %v464_v45 = vsel %vm463_vm6, %v1637_v30, %v462_v31  ;;  %v948_v57 = vpop.eup %947 }
 0x18f   :  { %v798_v43 = vadd.f32 %v1368_v0, %v762_v33  ;;  %v1721_v6 = vadd.f32 1e-06, %v460_v7  ;;  %955 = vrcp.f32 %v1714_v3  ;;  %v467_v32 = vsel %vm465_vm7, %v466_v39, %v464_v45  ;;  %v950_v54 = vpop.eup %949  ;;  %v287_v39 = vpop.xlane.xlu1 %286 }
 0x190   :  { %829 = vst [vmem:[#allocation7 + $0x68] sm:$0xff] %v797_v49  ;;  %v763_v12 = vmul.f32 %v1366_v63, %v727_v25  ;;  %v471_v56 = vsel %vm470_vm8, %v1640_v35, %v469_v4  ;;  %v1737_v48 = vadd.f32 1e-06, %v467_v32  ;;  %v476_v21 = vmul.f32 %v946_v46, %v1649_v26  ;;  %v952_v2 = vpop.eup %951 }
 0x191   :  { %830 = vst [vmem:[#allocation7 + $0x70] sm:$0xff] %v798_v43  ;;  %957 = vrcp.f32 %v1721_v6  ;;  %v474_v29 = vsel %vm472_vm9, %v473_v38, %v471_v56  ;;  %v483_v58 = vmul.f32 %v948_v57, %v1651_v62  ;;  %v494_v30 = vand.u32 2147483648, %v1655_v37  ;;  %v289_v41 = vpop.xlane.xlu0 %288 }
 0x192   :  { %v799_v19 = vadd.f32 %v1368_v0, %v763_v12  ;;  %v1744_v59 = vadd.f32 1e-06, %v474_v29  ;;  %959 = vrsqrt.f32 %v1705_v53  ;;  %v478_v35 = vsel %vm477_vm10, %v1649_v26, %v476_v21 }
 0x193   :  { %961 = vrcp.f32 %v1737_v48  ;;  %v485_v38 = vsel %vm484_vm11, %v1651_v62, %v483_v58  ;;  %v490_v34 = vmul.f32 %v950_v54, %v1655_v37  ;;  %v481_v55 = vsel %vm479_vm12, %v480_v23, %v478_v35  ;;  %v291_v60 = vpop.xlane.xlu1 %290 }
 0x194   :  { %831 = vst [vmem:[#allocation7 + $0x78] sm:$0xff] %v799_v19  ;;  %963 = vrcp.f32 %v1744_v59  ;;  %v488_v36 = vsel %vm486_vm13, %v487_v44, %v485_v38  ;;  %v1761_v52 = vmul.f32 0.007874016, %v285_v28  ;;  %v1763_v50 = vadd.f32 1e-06, %v481_v55 }
 0x195   :  { %v1765_v42 = vadd.f32 1e-06, %v488_v36  ;;  %v492_v47 = vsel %vm491_vm14, %v1655_v37, %v490_v34  ;;  %v497_v10 = vmul.f32 %v952_v2, %v1660_v27  ;;  %v501_v62 = vand.u32 2147483648, %v1660_v27  ;;  %v293_v31 = vpop.xlane.xlu0 %292 }
 0x196   :  { %v495_v26 = vsel %vm493_vm15, %v494_v30, %v492_v47  ;;  %965 = vrsqrt.f32 %v1761_v52  ;;  %vm500_vm1 = vcmp.eq.f32.partialorder %v1660_v27, 0.0  ;;  %v1782_v37 = vmul.f32 0.007874016, %v287_v39 }
 0x197   :  { %967 = vrcp.f32 %v1763_v50  ;;  %v1777_v23 = vadd.f32 1e-06, %v495_v26  ;;  %v499_v44 = vsel %vm498_vm0, %v1660_v27, %v497_v10  ;;  %v1789_v49 = vmul.f32 0.007874016, %v289_v41  ;;  %v295_v32 = vpop.xlane.xlu1 %294 }
 0x198   :  { %969 = vrcp.f32 %v1765_v42  ;;  %v502_v33 = vsel %vm500_vm1, %v501_v62, %v499_v44  ;;  %v1792_v27 = vmul.f32 0.007874016, %v291_v60  ;;  %vm505_vm2 = vcmp.eq.f32.partialorder %v1705_v53, inf }
 0x199   :  { %v954_v51 = vpop.eup %953  ;;  %971 = vrcp.f32 %v1777_v23  ;;  %v1786_v1 = vadd.f32 1e-06, %v502_v33  ;;  %vm507_vm3 = vcmp.eq.f32.partialorder %v1705_v53, 0.0  ;;  %v508_v46 = vand.u32 2147483648, %v1705_v53 }
 0x19a   :  { %v632_v8 = vmul.f32 %v954_v51, %v1689_v40  ;;  %973 = vrsqrt.f32 %v1782_v37  ;;  %v515_v45 = vand.u32 2147483648, %v1761_v52  ;;  %v522_v57 = vand.u32 2147483648, %v1782_v37 }
 0x19b   :  { %975 = vrcp.f32 %v1786_v1  ;;  %v1802_v12 = vmul.f32 0.007874016, %v293_v31  ;;  %vm512_vm4 = vcmp.eq.f32.partialorder %v1761_v52, inf  ;;  %v536_v19 = vand.u32 2147483648, %v1792_v27 }
 0x19c   :  { %v664_v7 = vsub.f32 2.0, %v632_v8  ;;  %v956_v43 = vpop.eup %955  ;;  %977 = vrsqrt.f32 %v1789_v49  ;;  %vm514_vm5 = vcmp.eq.f32.partialorder %v1761_v52, 0.0  ;;  %v1814_v38 = vmul.f32 0.007874016, %v295_v32 }
 0x19d   :  { %v633_v4 = vmul.f32 %v956_v43, %v1714_v3  ;;  %v529_v3 = vand.u32 2147483648, %v1789_v49  ;;  %979 = vrsqrt.f32 %v1792_v27  ;;  %v543_v36 = vand.u32 2147483648, %v1802_v12 }
 0x19e   :  { %v958_v40 = vpop.eup %957  ;;  %v696_v25 = vmul.f32 %v954_v51, %v664_v7  ;;  %981 = vrsqrt.f32 %v1802_v12  ;;  %vm519_vm6 = vcmp.eq.f32.partialorder %v1782_v37, inf  ;;  %vm521_vm7 = vcmp.eq.f32.partialorder %v1782_v37, 0.0 }
 0x19f   :  { %v634_v28 = vmul.f32 %v958_v40, %v1721_v6  ;;  %v960_v56 = vpop.eup %959  ;;  %v665_v21 = vsub.f32 2.0, %v633_v4  ;;  %983 = vrsqrt.f32 %v1814_v38  ;;  %vm526_vm8 = vcmp.eq.f32.partialorder %v1789_v49, inf }
 0x1a0   :  { %v728_v29 = vmul.f32 %v696_v25, %v1269_v61  ;;  %v962_v58 = vpop.eup %961  ;;  %v504_v6 = vmul.f32 %v960_v56, %v1705_v53  ;;  %vm528_vm9 = vcmp.eq.f32.partialorder %v1789_v49, 0.0  ;;  %vm533_vm10 = vcmp.eq.f32.partialorder %v1792_v27, inf }
 0x1a1   :  { %v666_v54 = vsub.f32 2.0, %v634_v28  ;;  %v964_v30 = vpop.eup %963  ;;  %v697_v35 = vmul.f32 %v956_v43, %v665_v21  ;;  %v635_v61 = vmul.f32 %v962_v58, %v1737_v48  ;;  %vm535_vm11 = vcmp.eq.f32.partialorder %v1792_v27, 0.0 }
 0x1a2   :  { %v764_v39 = vmul.f32 %v1366_v63, %v728_v29  ;;  %v636_v2 = vmul.f32 %v964_v30, %v1744_v59  ;;  %v506_v55 = vsel %vm505_vm2, %v1705_v53, %v504_v6  ;;  %vm540_vm12 = vcmp.eq.f32.partialorder %v1802_v12, inf }
 0x1a3   :  { %v698_v34 = vmul.f32 %v958_v40, %v666_v54  ;;  %v966_v47 = vpop.eup %965  ;;  %v729_v41 = vmul.f32 %v697_v35, %v1272_v14  ;;  %v667_v26 = vsub.f32 2.0, %v635_v61  ;;  %v509_v48 = vsel %vm507_vm3, %v508_v46, %v506_v55 }
 0x1a4   :  { %v800_v10 = vadd.f32 %v1368_v0, %v764_v39  ;;  %v968_v62 = vpop.eup %967  ;;  %v668_v44 = vsub.f32 2.0, %v636_v2  ;;  %v1827_v51 = vadd.f32 1e-06, %v509_v48  ;;  %v511_v33 = vmul.f32 %v966_v47, %v1761_v52 }
 0x1a5   :  { %v730_v59 = vmul.f32 %v698_v34, %v1279_v5  ;;  %v970_v60 = vpop.eup %969  ;;  %v765_v14 = vmul.f32 %v1366_v63, %v729_v41  ;;  %v699_v8 = vmul.f32 %v962_v58, %v667_v26  ;;  %v637_v53 = vmul.f32 %v968_v62, %v1763_v50 }
 0x1a6   :  { %832 = vst [vmem:[#allocation7 + $0x80] sm:$0xff] %v800_v10  ;;  %v972_v7 = vpop.eup %971  ;;  %v700_v5 = vmul.f32 %v964_v30, %v668_v44  ;;  %v638_v43 = vmul.f32 %v970_v60, %v1765_v42  ;;  %985 = vrcp.f32 %v1827_v51  ;;  %v513_v42 = vsel %vm512_vm4, %v1761_v52, %v511_v33 }
 0x1a7   :  { %v766_v31 = vmul.f32 %v1366_v63, %v730_v59  ;;  %v974_v40 = vpop.eup %973  ;;  %v801_v25 = vadd.f32 %v1368_v0, %v765_v14  ;;  %v731_v4 = vmul.f32 %v699_v8, %v1282_v16  ;;  %v669_v46 = vsub.f32 2.0, %v637_v53 }
 0x1a8   :  { %v639_v28 = vmul.f32 %v972_v7, %v1777_v23  ;;  %v976_v50 = vpop.eup %975  ;;  %v732_v56 = vmul.f32 %v700_v5, %v1289_v9  ;;  %v670_v29 = vsub.f32 2.0, %v638_v43  ;;  %v516_v6 = vsel %vm514_vm5, %v515_v45, %v513_v42 }
 0x1a9   :  { %v802_v32 = vadd.f32 %v1368_v0, %v766_v31  ;;  %833 = vst [vmem:[#allocation7 + $0x88] sm:$0xff] %v801_v25  ;;  %v767_v16 = vmul.f32 %v1366_v63, %v731_v4  ;;  %v701_v23 = vmul.f32 %v968_v62, %v669_v46  ;;  %v640_v58 = vmul.f32 %v976_v50, %v1786_v1  ;;  %v978_v39 = vpop.eup %977 }
 0x1aa   :  { %v671_v21 = vsub.f32 2.0, %v639_v28  ;;  %v768_v9 = vmul.f32 %v1366_v63, %v732_v56  ;;  %v702_v54 = vmul.f32 %v970_v60, %v670_v29  ;;  %v518_v30 = vmul.f32 %v974_v40, %v1782_v37  ;;  %v980_v2 = vpop.eup %979 }
 0x1ab   :  { %834 = vst [vmem:[#allocation7 + $0x90] sm:$0xff] %v802_v32  ;;  %v803_v35 = vadd.f32 %v1368_v0, %v767_v16  ;;  %v733_v1 = vmul.f32 %v701_v23, %v1292_v18  ;;  %v672_v34 = vsub.f32 2.0, %v640_v58  ;;  %v578_v10 = vadd.f32 1e-06, %v516_v6  ;;  %v982_v45 = vpop.eup %981 }
 0x1ac   :  { %v703_v61 = vmul.f32 %v972_v7, %v671_v21  ;;  %v804_v55 = vadd.f32 %v1368_v0, %v768_v9  ;;  %v734_v47 = vmul.f32 %v702_v54, %v1299_v11  ;;  %v520_v52 = vsel %vm519_vm6, %v1782_v37, %v518_v30  ;;  %v984_v31 = vpop.eup %983 }
 0x1ad   :  { %835 = vst [vmem:[#allocation7 + $0x98] sm:$0xff] %v803_v35  ;;  %v769_v41 = vmul.f32 %v1366_v63, %v733_v1  ;;  %v704_v48 = vmul.f32 %v976_v50, %v672_v34  ;;  %v523_v18 = vsel %vm521_vm7, %v522_v57, %v520_v52  ;;  %987 = vrcp.f32 %v578_v10 }
 0x1ae   :  { %v735_v26 = vmul.f32 %v703_v61, %v1302_v20  ;;  %836 = vst [vmem:[#allocation7 + $0xa0] sm:$0xff] %v804_v55  ;;  %v770_v11 = vmul.f32 %v1366_v63, %v734_v47  ;;  %v579_v62 = vadd.f32 1e-06, %v523_v18  ;;  %v525_v59 = vmul.f32 %v978_v39, %v1789_v49 }
 0x1af   :  { %v805_v44 = vadd.f32 %v1368_v0, %v769_v41  ;;  %v736_v60 = vmul.f32 %v704_v48, %v1309_v13  ;;  %v532_v20 = vmul.f32 %v980_v2, %v1792_v27  ;;  %v539_v57 = vmul.f32 %v982_v45, %v1802_v12 }
 0x1b0   :  { %v771_v33 = vmul.f32 %v1366_v63, %v735_v26  ;;  %v806_v14 = vadd.f32 %v1368_v0, %v770_v11  ;;  %989 = vrcp.f32 %v579_v62  ;;  %v527_v37 = vsel %vm526_vm8, %v1789_v49, %v525_v59 }
 0x1b1   :  { %837 = vst [vmem:[#allocation7 + $0xa8] sm:$0xff] %v805_v44  ;;  %v772_v53 = vmul.f32 %v1366_v63, %v736_v60  ;;  %v530_v13 = vsel %vm528_vm9, %v529_v3, %v527_v37  ;;  %v534_v7 = vsel %vm533_vm10, %v1792_v27, %v532_v20  ;;  %v541_v40 = vsel %vm540_vm12, %v1802_v12, %v539_v57  ;;  %v1946_v44 = vld [vmem:[#allocation11_spill] sm:$0xff]  ;;  %v1947_v60 = vld [vmem:[#allocation12_spill] sm:$0xff] }
 0x1b2   :  { %v807_v8 = vadd.f32 %v1368_v0, %v771_v33  ;;  %838 = vst [vmem:[#allocation7 + $0xb0] sm:$0xff] %v806_v14  ;;  %v580_v5 = vadd.f32 1e-06, %v530_v13  ;;  %v537_v43 = vsel %vm535_vm11, %v536_v19, %v534_v7  ;;  %vm542_vm13 = vcmp.eq.f32.partialorder %v1802_v12, 0.0  ;;  %v1948_v7 = vld [vmem:[#allocation13_spill] sm:$0xff] }
 0x1b3   :  { %v986_v49 = vpop.eup %985  ;;  %v808_v3 = vadd.f32 %v1368_v0, %v772_v53  ;;  %v581_v25 = vadd.f32 1e-06, %v537_v43  ;;  %v544_v4 = vsel %vm542_vm13, %v543_v36, %v541_v40  ;;  %v546_v46 = vmul.f32 %v984_v31, %v1814_v38 }
 0x1b4   :  { %839 = vst [vmem:[#allocation7 + $0xb8] sm:$0xff] %v807_v8  ;;  %v641_v28 = vmul.f32 %v986_v49, %v1827_v51  ;;  %991 = vrcp.f32 %v580_v5  ;;  %v582_v27 = vadd.f32 1e-06, %v544_v4  ;;  %vm547_vm14 = vcmp.eq.f32.partialorder %v1814_v38, inf }
 0x1b5   :  { %840 = vst [vmem:[#allocation7 + $0xc0] sm:$0xff] %v808_v3  ;;  %993 = vrcp.f32 %v581_v25  ;;  %v548_v19 = vsel %vm547_vm14, %v1814_v38, %v546_v46  ;;  %v550_v50 = vand.u32 2147483648, %v1814_v38  ;;  %vm549_vm15 = vcmp.eq.f32.partialorder %v1814_v38, 0.0 }
 0x1b6   :  { %v673_v32 = vsub.f32 2.0, %v641_v28  ;;  %995 = vrcp.f32 %v582_v27 }
 0x1b7   :  { %v551_v12 = vsel %vm549_vm15, %v550_v50, %v548_v19 }
 0x1b8   :  { %v705_v36 = vmul.f32 %v986_v49, %v673_v32  ;;  %v583_v56 = vadd.f32 1e-06, %v551_v12 }
 0x1ba   :  { %v737_v29 = vmul.f32 %v705_v36, %v1312_v22  ;;  %997 = vrcp.f32 %v583_v56  ;;  %v988_v51 = vpop.eup %987 }
 0x1bb   :  { %v642_v16 = vmul.f32 %v988_v51, %v578_v10 }
 0x1bc   :  { %v773_v42 = vmul.f32 %v1366_v63, %v737_v29 }
 0x1bd   :  { %v990_v23 = vpop.eup %989  ;;  %v674_v58 = vsub.f32 2.0, %v642_v16 }
 0x1be   :  { %v809_v21 = vadd.f32 %v1368_v0, %v773_v42  ;;  %v643_v9 = vmul.f32 %v990_v23, %v579_v62 }
 0x1bf   :  { %v706_v54 = vmul.f32 %v988_v51, %v674_v58 }
 0x1c0   :  { %841 = vst [vmem:[#allocation7 + $0xc8] sm:$0xff] %v809_v21  ;;  %v675_v6 = vsub.f32 2.0, %v643_v9 }
 0x1c1   :  { %v992_v30 = vpop.eup %991  ;;  %v738_v39 = vmul.f32 %v706_v54, %v1319_v15 }
 0x1c2   :  { %v994_v38 = vpop.eup %993  ;;  %v707_v35 = vmul.f32 %v990_v23, %v675_v6  ;;  %v644_v1 = vmul.f32 %v992_v30, %v580_v5 }
 0x1c3   :  { %v996_v22 = vpop.eup %995  ;;  %v645_v61 = vmul.f32 %v994_v38, %v581_v25  ;;  %v774_v34 = vmul.f32 %v1366_v63, %v738_v39 }
 0x1c4   :  { %v739_v2 = vmul.f32 %v707_v35, %v1322_v24  ;;  %v676_v55 = vsub.f32 2.0, %v644_v1  ;;  %v646_v47 = vmul.f32 %v996_v22, %v582_v27 }
 0x1c5   :  { %v677_v10 = vsub.f32 2.0, %v645_v61  ;;  %v810_v52 = vadd.f32 %v1368_v0, %v774_v34 }
 0x1c6   :  { %v775_v45 = vmul.f32 %v1366_v63, %v739_v2  ;;  %v708_v41 = vmul.f32 %v992_v30, %v676_v55  ;;  %v678_v26 = vsub.f32 2.0, %v646_v47 }
 0x1c7   :  { %v998_v48 = vpop.eup %997  ;;  %v709_v18 = vmul.f32 %v994_v38, %v677_v10  ;;  %842 = vst [vmem:[#allocation7 + $0xd0] sm:$0xff] %v810_v52 }
 0x1c8   :  { %v811_v15 = vadd.f32 %v1368_v0, %v775_v45  ;;  %v740_v11 = vmul.f32 %v708_v41, %v1329_v17  ;;  %v710_v62 = vmul.f32 %v996_v22, %v678_v26  ;;  %v647_v59 = vmul.f32 %v998_v48, %v583_v56 }
 0x1c9   :  { %v741_v24 = vmul.f32 %v709_v18, %v1946_v44 }
 0x1ca   :  { %843 = vst [vmem:[#allocation7 + $0xd8] sm:$0xff] %v811_v15  ;;  %v776_v33 = vmul.f32 %v1366_v63, %v740_v11  ;;  %v742_v20 = vmul.f32 %v710_v62, %v1947_v60  ;;  %v679_v14 = vsub.f32 2.0, %v647_v59 }
 0x1cb   :  { %v777_v37 = vmul.f32 %v1366_v63, %v741_v24 }
 0x1cc   :  { %v812_v57 = vadd.f32 %v1368_v0, %v776_v33  ;;  %v778_v8 = vmul.f32 %v1366_v63, %v742_v20  ;;  %v711_v53 = vmul.f32 %v998_v48, %v679_v14 }
 0x1cd   :  { %v813_v13 = vadd.f32 %v1368_v0, %v777_v37 }
 0x1ce   :  { %844 = vst [vmem:[#allocation7 + $0xe0] sm:$0xff] %v812_v57  ;;  %v814_v17 = vadd.f32 %v1368_v0, %v778_v8  ;;  %v743_v31 = vmul.f32 %v711_v53, %v1948_v7 }
 0x1cf   :  { %845 = vst [vmem:[#allocation7 + $0xe8] sm:$0xff] %v813_v13 }
 0x1d0   :  { %846 = vst [vmem:[#allocation7 + $0xf0] sm:$0xff] %v814_v17  ;;  %v779_v5 = vmul.f32 %v1366_v63, %v743_v31 }
 0x1d2   :  { %v815_v43 = vadd.f32 %v1368_v0, %v779_v5 }
 0x1d4   :  { %847 = vst [vmem:[#allocation7 + $0xf8] sm:$0xff] %v815_v43 }
 0x1d5   :  { %1050 = shalt.err (!%p1047_p0)
}
 0x1d6   :  { %859 = dma.vmem_to_hbm [thread:$0]  %s854_s1, 4096, %s1937_s2, [#allocation4], %s1066_s12, %s1066_s12, %s1067_s13  }
 0x1d7   :  { %1063 = dma.done.wait [#allocation4], 4096  }
 0x1d8   :  { %1064 = vsyncadd [#allocation4], 4294963200 }
 0x1d9   :  { %863 = vsyncpa [#allocation3], 1 }
 0x1da   :  { %864 = vsyncpa [#allocation6], 1 }
 0x1db   :  { %865 = vsyncpa [#allocation4], 1 }

</bundles_post_ra>
